<compile_context>
chip_gen: v7x
topology: tpu7x:2x2x1
jax: 0.10.0
libtpu: 0.0.40
codegen_flags: <defaults>
</compile_context>

<pallas_src>
import jax
import jax.numpy as jnp
from jax import lax
from jax.experimental import pallas as pl
from jax.experimental.pallas import tpu as pltpu

_LANES = 128


def _head_kernel(x_ref, wq_ref, bq_ref, wk_ref, bk_ref, wv_ref, bv_ref, o_ref):
    B, T, C = x_ref.shape
    H = wq_ref.shape[1]
    out_lanes = o_ref.shape[1]

    # Fused-row projection: one (B*T, C) x (C, H) MXU pass per weight.
    x2d = x_ref[...].reshape(B * T, C)                        # (B*T, C)
    scale = float(C) ** -0.5                                  # compile-time constant
    q = (jnp.dot(x2d, wq_ref[...], preferred_element_type=jnp.float32)
         + bq_ref[...]) * scale                               # (B*T, H), pre-scaled
    k = jnp.dot(x2d, wk_ref[...], preferred_element_type=jnp.float32) + bk_ref[...]
    v = jnp.dot(x2d, wv_ref[...], preferred_element_type=jnp.float32) + bv_ref[...]

    # Zero-pad value columns to a full lane tile so wei @ v directly yields a
    # lane-dense result (free on the MXU; avoids masked partial stores).
    if out_lanes > H:
        v = jnp.concatenate(
            [v, jnp.zeros((B * T, out_lanes - H), jnp.float32)], axis=1)

    # Causal (tril) mask built in-kernel; shared across batches.
    row = lax.broadcasted_iota(jnp.int32, (T, T), 0)
    col = lax.broadcasted_iota(jnp.int32, (T, T), 1)
    causal = row >= col

    # Attention per batch, unrolled (B is tiny); all slices are sublane-tile aligned.
    for b in range(B):
        qb = q[b * T:(b + 1) * T, :]                          # (T, H)
        kb = k[b * T:(b + 1) * T, :]                          # (T, H)
        vb = v[b * T:(b + 1) * T, :]                          # (T, out_lanes)

        # q @ k^T by contracting the head axis directly (no k transpose materialized).
        wei = lax.dot_general(qb, kb, (((1,), (1,)), ((), ())),
                              preferred_element_type=jnp.float32)   # (T, T)
        wei = jnp.where(causal, wei, jnp.float32(-1e30))

        # Numerically stable, exact softmax.
        m = jnp.max(wei, axis=-1, keepdims=True)
        e = jnp.exp(wei - m)
        p = e / jnp.sum(e, axis=-1, keepdims=True)

        o_ref[b * T:(b + 1) * T, :] = jnp.dot(
            p, vb, preferred_element_type=jnp.float32).astype(o_ref.dtype)


@jax.jit
def head_forward(x, wq, bq, wk, bk, wv, bv):
    """x: (B, T, C) f32. Weights (C, H), biases (1, H). Returns (B, T, H)."""
    B, T, C = x.shape
    H = wq.shape[1]
    out_lanes = max(_LANES, ((H + _LANES - 1) // _LANES) * _LANES)

    flops = 2 * (B * T) * C * (3 * H) + B * (2 * T * T * H) * 2
    transcendentals = B * T * T
    bytes_accessed = 4 * (x.size + 3 * wq.size + 3 * bq.size + B * T * out_lanes)

    out_padded = pl.pallas_call(
        _head_kernel,
        out_shape=jax.ShapeDtypeStruct((B * T, out_lanes), jnp.float32),
        in_specs=[pl.BlockSpec(memory_space=pltpu.MemorySpace.VMEM)] * 7,
        out_specs=pl.BlockSpec(memory_space=pltpu.MemorySpace.VMEM),
        cost_estimate=pl.CostEstimate(
            flops=flops, transcendentals=transcendentals,
            bytes_accessed=bytes_accessed),
    )(x, wq, bq, wk, bk, wv, bv)

    # Layout plumbing only: drop the lane padding and restore (B, T, H).
    return out_padded[:, :H].reshape(B, T, H)


def _reference(x, wq, bq, wk, bk, wv, bv):
    B, T, C = x.shape
    q = x @ wq + bq
    k = x @ wk + bk
    v = x @ wv + bv
    wei = jnp.einsum("btd,bsd->bts", q, k) * (C ** -0.5)
    tril = jnp.tril(jnp.ones((T, T), dtype=jnp.float32))
    wei = jnp.where(tril[None, :, :] == 0, -jnp.inf, wei)
    wei = jax.nn.softmax(wei, axis=-1)
    return wei @ v


if __name__ == "__main__":
    # Config: n_embd=32, n_heads=4 -> head_size=8, cw_size=T=8, batch B=2.
    B, T, C, n_heads = 2, 8, 32, 4
    H = C // n_heads

    key = jax.random.PRNGKey(0)
    kx, kq, kk, kv, kbq, kbk, kbv = jax.random.split(key, 7)

    bound = 1.0 / (C ** 0.5)
    x = jax.random.normal(kx, (B, T, C), dtype=jnp.float32)
    wq = jax.random.uniform(kq, (C, H), jnp.float32, -bound, bound)
    wk = jax.random.uniform(kk, (C, H), jnp.float32, -bound, bound)
    wv = jax.random.uniform(kv, (C, H), jnp.float32, -bound, bound)
    bq = jax.random.uniform(kbq, (1, H), jnp.float32, -bound, bound)
    bk = jax.random.uniform(kbk, (1, H), jnp.float32, -bound, bound)
    bv = jax.random.uniform(kbv, (1, H), jnp.float32, -bound, bound)

    out = head_forward(x, wq, bq, wk, bk, wv, bv)
    out = jax.block_until_ready(out)

    ref = _reference(x, wq, bq, wk, bk, wv, bv)
    assert out.shape == (B, T, H)
    assert jnp.allclose(out, ref, atol=1e-4, rtol=1e-4), "mismatch vs reference"

    print("KERNEL_OK")
</pallas_src>

<mosaic_0001>
module attributes {stable_mosaic.version = 11 : i64} {
  func.func @_head_kernel(%arg0: memref<2x8x32xf32, #tpu.memory_space<vmem>>, %arg1: memref<32x8xf32, #tpu.memory_space<vmem>>, %arg2: memref<1x8xf32, #tpu.memory_space<vmem>>, %arg3: memref<32x8xf32, #tpu.memory_space<vmem>>, %arg4: memref<1x8xf32, #tpu.memory_space<vmem>>, %arg5: memref<32x8xf32, #tpu.memory_space<vmem>>, %arg6: memref<1x8xf32, #tpu.memory_space<vmem>>, %arg7: memref<16x128xf32, #tpu.memory_space<vmem>>) attributes {dimension_semantics = [], scalar_prefetch = 0 : i64, scratch_operands = 0 : i64, tpu.core_type = #tpu.core_type<tc>} {
    %c0 = arith.constant 0 : index
    %c0_0 = arith.constant 0 : index
    %c0_1 = arith.constant 0 : index
    %0 = vector.load %arg0[%c0, %c0_0, %c0_1] : memref<2x8x32xf32, #tpu.memory_space<vmem>>, vector<2x8x32xf32>
    %1 = vector.shape_cast %0 : vector<2x8x32xf32> to vector<16x32xf32>
    %c0_2 = arith.constant 0 : index
    %c0_3 = arith.constant 0 : index
    %2 = vector.load %arg1[%c0_2, %c0_3] : memref<32x8xf32, #tpu.memory_space<vmem>>, vector<32x8xf32>
    %cst = arith.constant dense<0.000000e+00> : vector<16x8xf32>
    %3 = tpu.matmul %1, %2, %cst {dimension_numbers = #tpu.dot_dimension_numbers<[1], [0], [0], [1], [0, 0, 1, 1], [], []>} : vector<16x32xf32>, vector<32x8xf32>, vector<16x8xf32> -> vector<16x8xf32>
    %c0_4 = arith.constant 0 : index
    %c0_5 = arith.constant 0 : index
    %4 = vector.load %arg2[%c0_4, %c0_5] : memref<1x8xf32, #tpu.memory_space<vmem>>, vector<1x8xf32>
    %5 = vector.broadcast %4 : vector<1x8xf32> to vector<16x8xf32>
    %6 = arith.addf %3, %5 : vector<16x8xf32>
    %cst_6 = arith.constant 0.176776692 : f32
    %7 = vector.broadcast %cst_6 : f32 to vector<16x8xf32>
    %8 = arith.mulf %6, %7 : vector<16x8xf32>
    %c0_7 = arith.constant 0 : index
    %c0_8 = arith.constant 0 : index
    %9 = vector.load %arg3[%c0_7, %c0_8] : memref<32x8xf32, #tpu.memory_space<vmem>>, vector<32x8xf32>
    %cst_9 = arith.constant dense<0.000000e+00> : vector<16x8xf32>
    %10 = tpu.matmul %1, %9, %cst_9 {dimension_numbers = #tpu.dot_dimension_numbers<[1], [0], [0], [1], [0, 0, 1, 1], [], []>} : vector<16x32xf32>, vector<32x8xf32>, vector<16x8xf32> -> vector<16x8xf32>
    %c0_10 = arith.constant 0 : index
    %c0_11 = arith.constant 0 : index
    %11 = vector.load %arg4[%c0_10, %c0_11] : memref<1x8xf32, #tpu.memory_space<vmem>>, vector<1x8xf32>
    %12 = vector.broadcast %11 : vector<1x8xf32> to vector<16x8xf32>
    %13 = arith.addf %10, %12 : vector<16x8xf32>
    %c0_12 = arith.constant 0 : index
    %c0_13 = arith.constant 0 : index
    %14 = vector.load %arg5[%c0_12, %c0_13] : memref<32x8xf32, #tpu.memory_space<vmem>>, vector<32x8xf32>
    %cst_14 = arith.constant dense<0.000000e+00> : vector<16x8xf32>
    %15 = tpu.matmul %1, %14, %cst_14 {dimension_numbers = #tpu.dot_dimension_numbers<[1], [0], [0], [1], [0, 0, 1, 1], [], []>} : vector<16x32xf32>, vector<32x8xf32>, vector<16x8xf32> -> vector<16x8xf32>
    %c0_15 = arith.constant 0 : index
    %c0_16 = arith.constant 0 : index
    %16 = vector.load %arg6[%c0_15, %c0_16] : memref<1x8xf32, #tpu.memory_space<vmem>>, vector<1x8xf32>
    %17 = vector.broadcast %16 : vector<1x8xf32> to vector<16x8xf32>
    %18 = arith.addf %15, %17 : vector<16x8xf32>
    %cst_17 = arith.constant 0.000000e+00 : f32
    %19 = vector.broadcast %cst_17 : f32 to vector<16x120xf32>
    %20 = tpu.concatenate %18, %19 in 1 : vector<16x8xf32>, vector<16x120xf32> -> vector<16x128xf32>
    %21 = tpu.iota {dimensions = array<i32: 0>} : vector<8x8xi32>
    %22 = tpu.iota {dimensions = array<i32: 1>} : vector<8x8xi32>
    %23 = arith.cmpi sge, %21, %22 : vector<8x8xi32>
    %24 = vector.extract_strided_slice %8 {offsets = [0, 0], sizes = [8, 8], strides = [1, 1]} : vector<16x8xf32> to vector<8x8xf32>
    %25 = vector.extract_strided_slice %13 {offsets = [0, 0], sizes = [8, 8], strides = [1, 1]} : vector<16x8xf32> to vector<8x8xf32>
    %26 = vector.extract_strided_slice %20 {offsets = [0, 0], sizes = [8, 128], strides = [1, 1]} : vector<16x128xf32> to vector<8x128xf32>
    %cst_18 = arith.constant dense<0.000000e+00> : vector<8x8xf32>
    %27 = tpu.matmul %24, %25, %cst_18 {dimension_numbers = #tpu.dot_dimension_numbers<[1], [1], [0], [0], [0, 0, 1, 0], [], []>} : vector<8x8xf32>, vector<8x8xf32>, vector<8x8xf32> -> vector<8x8xf32>
    %cst_19 = arith.constant -1.000000e+30 : f32
    %28 = vector.broadcast %cst_19 : f32 to vector<8x8xf32>
    %29 = arith.select %23, %27, %28 : vector<8x8xi1>, vector<8x8xf32>
    %cst_20 = arith.constant dense<0xFF800000> : vector<8xf32>
    %30 = vector.multi_reduction <maximumf>, %29, %cst_20 [1] : vector<8x8xf32> to vector<8xf32>
    %31 = vector.shape_cast %30 : vector<8xf32> to vector<8x1xf32>
    %32 = vector.broadcast %31 : vector<8x1xf32> to vector<8x8xf32>
    %33 = arith.subf %29, %32 : vector<8x8xf32>
    %34 = math.exp %33 : vector<8x8xf32>
    %cst_21 = arith.constant dense<0.000000e+00> : vector<8xf32>
    %35 = vector.multi_reduction <add>, %34, %cst_21 [1] : vector<8x8xf32> to vector<8xf32>
    %36 = vector.shape_cast %35 : vector<8xf32> to vector<8x1xf32>
    %37 = vector.broadcast %36 : vector<8x1xf32> to vector<8x8xf32>
    %38 = arith.divf %34, %37 : vector<8x8xf32>
    %cst_22 = arith.constant dense<0.000000e+00> : vector<8x128xf32>
    %39 = tpu.matmul %38, %26, %cst_22 {dimension_numbers = #tpu.dot_dimension_numbers<[1], [0], [0], [1], [0, 0, 1, 1], [], []>} : vector<8x8xf32>, vector<8x128xf32>, vector<8x128xf32> -> vector<8x128xf32>
    %c0_23 = arith.constant 0 : index
    %c0_24 = arith.constant 0 : index
    %40 = vector.load %arg7[%c0_23, %c0_24] : memref<16x128xf32, #tpu.memory_space<vmem>>, vector<8x128xf32>
    tpu.vector_store %arg7[%c0_23, %c0_24], %39 {strides = array<i32>} : memref<16x128xf32, #tpu.memory_space<vmem>>, vector<8x128xf32>,
    %41 = vector.extract_strided_slice %8 {offsets = [8, 0], sizes = [8, 8], strides = [1, 1]} : vector<16x8xf32> to vector<8x8xf32>
    %42 = vector.extract_strided_slice %13 {offsets = [8, 0], sizes = [8, 8], strides = [1, 1]} : vector<16x8xf32> to vector<8x8xf32>
    %43 = vector.extract_strided_slice %20 {offsets = [8, 0], sizes = [8, 128], strides = [1, 1]} : vector<16x128xf32> to vector<8x128xf32>
    %cst_25 = arith.constant dense<0.000000e+00> : vector<8x8xf32>
    %44 = tpu.matmul %41, %42, %cst_25 {dimension_numbers = #tpu.dot_dimension_numbers<[1], [1], [0], [0], [0, 0, 1, 0], [], []>} : vector<8x8xf32>, vector<8x8xf32>, vector<8x8xf32> -> vector<8x8xf32>
    %cst_26 = arith.constant -1.000000e+30 : f32
    %45 = vector.broadcast %cst_26 : f32 to vector<8x8xf32>
    %46 = arith.select %23, %44, %45 : vector<8x8xi1>, vector<8x8xf32>
    %cst_27 = arith.constant dense<0xFF800000> : vector<8xf32>
    %47 = vector.multi_reduction <maximumf>, %46, %cst_27 [1] : vector<8x8xf32> to vector<8xf32>
    %48 = vector.shape_cast %47 : vector<8xf32> to vector<8x1xf32>
    %49 = vector.broadcast %48 : vector<8x1xf32> to vector<8x8xf32>
    %50 = arith.subf %46, %49 : vector<8x8xf32>
    %51 = math.exp %50 : vector<8x8xf32>
    %cst_28 = arith.constant dense<0.000000e+00> : vector<8xf32>
    %52 = vector.multi_reduction <add>, %51, %cst_28 [1] : vector<8x8xf32> to vector<8xf32>
    %53 = vector.shape_cast %52 : vector<8xf32> to vector<8x1xf32>
    %54 = vector.broadcast %53 : vector<8x1xf32> to vector<8x8xf32>
    %55 = arith.divf %51, %54 : vector<8x8xf32>
    %cst_29 = arith.constant dense<0.000000e+00> : vector<8x128xf32>
    %56 = tpu.matmul %55, %43, %cst_29 {dimension_numbers = #tpu.dot_dimension_numbers<[1], [0], [0], [1], [0, 0, 1, 1], [], []>} : vector<8x8xf32>, vector<8x128xf32>, vector<8x128xf32> -> vector<8x128xf32>
    %c8 = arith.constant 8 : index
    %c0_30 = arith.constant 0 : index
    %57 = vector.load %arg7[%c8, %c0_30] : memref<16x128xf32, #tpu.memory_space<vmem>>, vector<8x128xf32>
    tpu.vector_store %arg7[%c8, %c0_30], %56 {strides = array<i32>} : memref<16x128xf32, #tpu.memory_space<vmem>>, vector<8x128xf32>,
    return
  }
}

</mosaic_0001>

<bundles_post_ra>
// kernel: head_forward.1
= control target key start
LH: loop header
LB: loop body
LE: loop exit
PB: predicated region body
PF: predicated region fallthrough
CT: control target
= control target key end

     0   :  { %vm39_vm0 = vcmask 261120   ;;  %v761_v20 = vmov 0.0   ;;  %vm762_vm1 = vmmov 0   ;;  %vm295_vm2 = vcmask 64512   ;;  %s890_s3 = inlined_call_operand.vmem [shape: f32[32,8], index: 3, kind: input, shape index: {}]   ;;  %s891_s1 = inlined_call_operand.vmem [shape: f32[32,8], index: 1, kind: input, shape index: {}]   ;;  %s892_s0 = inlined_call_operand.vmem [shape: f32[2,8,32], index: 0, kind: input, shape index: {}]   ;;  %s893_s5 = inlined_call_operand.vmem [shape: f32[32,8], index: 5, kind: input, shape index: {}]   ;;  %s894_s4 = inlined_call_operand.vmem [shape: f32[1,8], index: 4, kind: input, shape index: {}]   ;;  %s895_s2 = inlined_call_operand.vmem [shape: f32[1,8], index: 2, kind: input, shape index: {}]   ;;  %s896_s6 = inlined_call_operand.vmem [shape: f32[1,8], index: 6, kind: input, shape index: {}]   ;;  %s897_s7 = inlined_call_operand.vmem [shape: f32[16,128], index: 7, kind: output, shape index: {}]  }
   0x1   :  { %v123_v0 = vld [vmem:[%s890_s3] sm:$0xff]  ;;  %v124_v1 = vld [vmem:[%s890_s3 + $0x8] sm:$0xff]  ;;  %v125_v5 = vld [vmem:[%s890_s3 + $0x10] sm:$0xff]  ;;  %v298_v38 = vlaneseq }
   0x2   :  { %v28_v2 = vld [vmem:[%s891_s1] sm:$0xff]  ;;  %v735_v3 = vpack.c.bf16 %v124_v1, %v123_v0  ;;  %v29_v4 = vld [vmem:[%s891_s1 + $0x8] sm:$0xff]  ;;  %v126_v6 = vld [vmem:[%s890_s3 + $0x18] sm:$0xff] }
   0x3   :  { %v727_v7 = vpack.c.bf16 %v29_v4, %v28_v2  ;;  %v739_v8 = vpack.c.bf16 %v126_v6, %v125_v5  ;;  %v30_v9 = vld [vmem:[%s891_s1 + $0x10] sm:$0xff]  ;;  %v31_v10 = vld [vmem:[%s891_s1 + $0x18] sm:$0xff]  ;;  %v26_v11 = vld [vmem:[%s892_s0] sm:$0xff]  ;;  %v299_v39 = vshrl.u32 %v298_v38, 7  ;;  %v301_v40 = vand.u32 127, %v298_v38 }
   0x4   :  { %736 = vmatprep.subr.bf16.mxu1 %v735_v3  ;;  %v731_v12 = vpack.c.bf16 %v31_v10, %v30_v9  ;;  %693 = vmatprep.mubr.msk.f32.mxu1 %vm39_vm0, %v26_v11  ;;  %v209_v13 = vld [vmem:[%s893_s5] sm:$0xff]  ;;  %v210_v14 = vld [vmem:[%s893_s5 + $0x8] sm:$0xff]  ;;  %v211_v16 = vld [vmem:[%s893_s5 + $0x10] sm:$0xff] }
   0x5   :  { %728 = vmatprep.subr.bf16.mxu0 %v727_v7  ;;  %738 = vmatpush3.bf16.msra.mxu1 %v735_v3  ;;  %v743_v15 = vpack.c.bf16 %v210_v14, %v209_v13  ;;  %v212_v17 = vld [vmem:[%s893_s5 + $0x18] sm:$0xff]  ;;  %v27_v18 = vld [vmem:[%s892_s0 + $0x8] sm:$0xff]  ;;  %v634_v21 = vld [vmem:[%s894_s4] ss:$0 sm:$0xff]  ;;  %vm302_vm3 = vcmp.ge.s32.totalorder %v299_v39, %v301_v40 }
   0x6   :  { %730 = vmatpush3.bf16.msra.mxu0 %v727_v7  ;;  %740 = vmatprep.subr.bf16.mxu1 %v739_v8  ;;  %v747_v19 = vpack.c.bf16 %v212_v17, %v211_v16  ;;  %v631_v22 = vld [vmem:[%s895_s2] ss:$0 sm:$0xff] }
   0x7   :  { %732 = vmatprep.subr.bf16.mxu0 %v731_v12  ;;  %682 = vmatprep.mubr.msk.f32.mxu0 %vm39_vm0, %v26_v11  ;;  %v637_v33 = vld [vmem:[%s896_s6] ss:$0 sm:$0xff] }
   0x9   :  { %742 = vmatpush3.bf16.msra.mxu1 %v739_v8 }
   0xa   :  { %734 = vmatpush3.bf16.msra.mxu0 %v731_v12  ;;  %707 = vmatprep.subr.mxu1 %v761_v20 }
   0xb   :  { %744 = vmatprep.subr.bf16.mxu0 %v743_v15 }
   0xc   :  { %694 = vmatmul.mubr.msk.f32.vlgmr.msra.gmra.mrb[0].mxu1 %vm39_vm0, %v27_v18 }
   0xd   :  { %683 = vmatmul.mubr.msk.f32.vlgmr.msra.gmra.mrb[0].mxu0 %vm39_vm0, %v27_v18  ;;  %709 = vmatprep.mubr.msk.f32.mxu1 %vm762_vm1, %v761_v20 }
   0xe   :  { %746 = vmatpush3.bf16.msra.mxu0 %v743_v15  ;;  %704 = vmatprep.mubr.msk.f32.mxu0 %vm39_vm0, %v26_v11 }
   0xf   :  { %748 = vmatprep.subr.bf16.mxu0 %v747_v19 }
  0x12   :  { %750 = vmatpush3.bf16.msra.mxu0 %v747_v19 }
  0x13   :  { %717 = vmatprep.subr.mxu0 %v761_v20 }
  0x15   :  { %705 = vmatmul.mubr.msk.f32.vlgmr.msra.gmra.mrb[2].mxu0 %vm39_vm0, %v27_v18 }
  0x16   :  { %719 = vmatprep.mubr.msk.f32.mxu0 %vm762_vm1, %v761_v20 }
  0xdf   :  { %v695_v23 = vpop.f32.mrb[0].mxu1 }
  0xe0   :  { %v206_v24 = vadd.f32 %v695_v23, %v634_v21  ;;  %v684_v25 = vpop.f32.mrb[0].mxu0  ;;  %v200_v26 = vpop.f32.mrb[1].mxu1 }
  0xe1   :  { %v118_v27 = vadd.f32 %v684_v25, %v631_v22  ;;  %v201_v28 = vadd.f32 %v634_v21, %v200_v26  ;;  %v112_v29 = vpop.f32.mrb[1].mxu0 }
  0xe2   :  { %v113_v30 = vadd.f32 %v631_v22, %v112_v29  ;;  %718 = vmatpush3.xpose.msk.msra.mxu0 %vm295_vm2, %v206_v24 }
  0xe3   :  { %v122_v31 = vmul.f32 0.17677669, %v118_v27  ;;  %708 = vmatpush3.xpose.msk.msra.mxu1 %vm295_vm2, %v201_v28 }
  0xe4   :  { %v121_v32 = vmul.f32 0.17677669, %v113_v30  ;;  %712 = vmatprep.subr.mxu1 %v761_v20 }
  0xe5   :  { %720 = vmatmul.mubr.msk.f32.vlgmr.msra.gmra.mrb[4].mxu0 %vm295_vm2, %v122_v31 }
  0xe6   :  { %710 = vmatmul.mubr.msk.f32.vlgmr.msra.gmra.mrb[2].mxu1 %vm295_vm2, %v121_v32 }
  0xe7   :  { %714 = vmatprep.mubr.msk.f32.mxu1 %vm762_vm1, %v761_v20 }
  0xe8   :  { %v706_v34 = vpop.f32.mrb[2].mxu0 }
  0xe9   :  { %v292_v35 = vadd.f32 %v706_v34, %v637_v33  ;;  %v286_v36 = vpop.f32.mrb[3].mxu0 }
  0xea   :  { %v287_v37 = vadd.f32 %v637_v33, %v286_v36 }
  0xec   :  { %713 = vmatpush3.msk.msra.mxu1 %vm295_vm2, %v287_v37 }
  0xed   :  { %722 = vmatprep.subr.mxu1 %v761_v20 }
 0x1b8   :  { %v537_v41 = vpop.f32.mrb[4].mxu0 }
 0x1b9   :  { %v375_v42 = vpop.f32.mrb[2].mxu1  ;;  %v721_v43 = vpop.f32.mrb[5].mxu0  ;;  %v541_v47 = vsel %vm302_vm3, %v537_v41, -1e+30 }
 0x1ba   :  { %v379_v44 = vsel %vm302_vm3, %v375_v42, -1e+30  ;;  %v711_v45 = vpop.f32.mrb[3].mxu1  ;;  %v542_v48 = vsel %vm295_vm2, %v541_v47, -inf }
 0x1bb   :  { %v380_v46 = vsel %vm295_vm2, %v379_v44, -inf }
 0x1bc   :  { %381 = vmax.xlane.f32.xlu0 %v380_v46 }
 0x1c0   :  { %543 = vmax.xlane.f32.xlu0 %v542_v48 }
 0x249   :  { %v382_v49 = vpop.xlane.xlu0 %381 }
 0x24a   :  { %v383_v50 = vsub.f32 %v379_v44, %v382_v49 }
 0x24c   :  { %v384_v51 = vmul.f32 1.442695, %v383_v50 }
 0x24d   :  { %v544_v52 = vpop.xlane.xlu0 %543 }
 0x24e   :  { %753 = vpow2.f32 %v384_v51  ;;  %v545_v53 = vsub.f32 %v541_v47, %v544_v52 }
 0x250   :  { %v546_v54 = vmul.f32 1.442695, %v545_v53 }
 0x252   :  { %755 = vpow2.f32 %v546_v54 }
 0x258   :  { %v754_v55 = vpop.eup %753 }
 0x259   :  { %v386_v56 = vsel %vm295_vm2, %v754_v55, 0.0 }
 0x25a   :  { %387 = vadd.xlane.f32.xlu1 %v386_v56 }
 0x25c   :  { %v756_v57 = vpop.eup %755 }
 0x25d   :  { %v548_v58 = vsel %vm295_vm2, %v756_v57, 0.0 }
 0x25e   :  { %549 = vadd.xlane.f32.xlu1 %v548_v58 }
 0x2e7   :  { %v388_v59 = vpop.xlane.xlu1 %387 }
 0x2e8   :  { %757 = vrcp.f32 %v388_v59 }
 0x2eb   :  { %v550_v60 = vpop.xlane.xlu1 %549 }
 0x2ec   :  { %759 = vrcp.f32 %v550_v60 }
 0x2f2   :  { %v758_v61 = vpop.eup %757 }
 0x2f3   :  { %v390_v62 = vmul.f32 %v758_v61, %v754_v55 }
 0x2f5   :  { %715 = vmatmul.mubr.msk.f32.vlgmr.msra.gmra.mrb[4].mxu1 %vm295_vm2, %v390_v62 }
 0x2f6   :  { %v760_v63 = vpop.eup %759  ;;  %723 = vmatpush3.msk.msra.mxu1 %vm295_vm2, %v292_v35  ;;  %724 = vmatprep.mubr.msk.f32.mxu1 %vm762_vm1, %v761_v20 }
 0x2f7   :  { %v552_v0 = vmul.f32 %v760_v63, %v756_v57 }
 0x2f9   :  { %725 = vmatmul.mubr.msk.f32.vlgmr.msra.gmra.mrb[6].mxu1 %vm295_vm2, %v552_v0 }
 0x3c8   :  { %v460_v1 = vpop.f32.mrb[4].mxu1 }
 0x3c9   :  { %464 = vst [vmem:[%s897_s7] sm:$0xff] %v460_v1  ;;  %v716_v2 = vpop.f32.mrb[5].mxu1 }
 0x3cc   :  { %v622_v3 = vpop.f32.mrb[6].mxu1 }
 0x3cd   :  { %626 = vst [vmem:[%s897_s7 + $0x8] sm:$0xff] %v622_v3  ;;  %v726_v4 = vpop.f32.mrb[7].mxu1 }

</bundles_post_ra>
